<compile_context>
chip_gen: v6e
topology: v6e:2x2x1
jax: 0.10.0
libtpu: 0.0.40
codegen_flags: <defaults>
</compile_context>

<pallas_src>
import functools

import jax
import jax.numpy as jnp
from jax.experimental import pallas as pl
from jax.experimental.pallas import tpu as pltpu


def _round_up(v, m):
    return ((v + m - 1) // m) * m


def _pick_tk(d_in, max_tk=1024):
    """K-tile size: full D_in if small, else a multiple of 128 dividing D_in."""
    if d_in <= max_tk:
        return d_in
    for tk in range(max_tk, 127, -128):
        if d_in % tk == 0:
            return tk
    # TODO(synk): pad D_in to a multiple of 128 to enable K streaming here.
    return d_in  # fall back to resident weights


def _aggregator_kernel(x_ref, w_ref, b_ref, o_ref, acc_ref, *, n_models, d_out_pad):
    k = pl.program_id(1)

    @pl.when(k == 0)
    def _():
        acc_ref[...] = jnp.zeros_like(acc_ref)

    # One wide lane-dense MXU matmul per (batch-tile, K-tile):
    #   [tb, tk](bf16) @ [tk, M*D_out_pad](bf16) -> f32 accumulate.
    acc_ref[...] += jnp.dot(
        x_ref[...].astype(jnp.bfloat16),
        w_ref[...],
        preferred_element_type=jnp.float32,
    )

    @pl.when(k == pl.num_programs(1) - 1)
    def _():
        # Single lane-aligned wide bias add + clamp(0), all in f32.
        y = acc_ref[...] + b_ref[...]
        y = jnp.maximum(y, 0.0)
        # Mean over models: static 128-aligned lane slices, accumulated.
        s = y[:, :d_out_pad]
        for m in range(1, n_models):
            s = s + y[:, m * d_out_pad:(m + 1) * d_out_pad]
        o_ref[...] = (s * (1.0 / n_models)).astype(o_ref.dtype)


def prepare_aggregator_params(w_stack, b_stack):
    """One-time (load-time) weight layout prep.

    w_stack: [M, D_in, D_out] f32, b_stack: [M, D_out] f32
    Returns:
      w_flat: [D_in, M*D_out_pad] bf16   (model m owns lanes [m*Dp, (m+1)*Dp))
      b_wide: [1,    M*D_out_pad] f32
    """
    M, D_in, D_out = w_stack.shape
    d_out_pad = _round_up(D_out, 128)
    if d_out_pad != D_out:
        pad = d_out_pad - D_out
        w_stack = jnp.pad(w_stack, ((0, 0), (0, 0), (0, pad)))
        b_stack = jnp.pad(b_stack, ((0, 0), (0, pad)))
    w_flat = (
        jnp.transpose(w_stack, (1, 0, 2))
        .reshape(D_in, M * d_out_pad)
        .astype(jnp.bfloat16)
    )
    b_wide = b_stack.reshape(1, M * d_out_pad).astype(jnp.float32)
    return w_flat, b_wide


def model_aggregator(x, w_flat, b_wide, d_out, *, block_b=256, max_tk=1024):
    """x: [B, D_in] f32, prepared (w_flat, b_wide) -> [B, d_out] f32."""
    B, D_in = x.shape
    Np = w_flat.shape[1]
    d_out_pad = _round_up(d_out, 128)
    n_models = Np // d_out_pad

    # --- batch tile: keep sublane-aligned; >= 2 steps for v7x megacore ---
    tb = B if B <= block_b else block_b
    if B > 128 and tb >= B:
        tb = _round_up(-(-B // 2), 8)  # split so both v7x TCs get work
    grid_b = pl.cdiv(B, tb)

    # --- K tile: stream weights when D_in is large ---
    tk = _pick_tk(D_in, max_tk)
    k_steps = pl.cdiv(D_in, tk)

    grid = (grid_b, k_steps)

    # Weight block is grid-invariant when K fits in one step -> single buffer.
    w_pipeline = pl.Buffered(1) if k_steps == 1 else pl.Buffered(2)

    # --- VMEM budget (bytes), re-derived per call ---
    w_bufs = 1 if k_steps == 1 else 2
    needed = (
        2 * tb * tk * 4            # x tiles (double-buffered, f32 in HBM)
        + w_bufs * tk * Np * 2     # weight tiles (bf16)
        + 2 * Np * 4               # wide bias
        + tb * Np * 4              # f32 accumulator scratch
        + 2 * tb * d_out_pad * 4   # output tiles (double-buffered)
    )
    vmem_limit = int(min(max(needed * 2, 32 << 20), 64 << 20))

    cost = pl.CostEstimate(
        flops=2 * B * D_in * Np,
        transcendentals=0,
        bytes_accessed=B * D_in * 4 + D_in * Np * 2 + Np * 4 + B * d_out_pad * 4,
    )

    kernel = functools.partial(
        _aggregator_kernel, n_models=n_models, d_out_pad=d_out_pad
    )

    out = pl.pallas_call(
        kernel,
        out_shape=jax.ShapeDtypeStruct((B, d_out_pad), jnp.float32),
        grid_spec=pltpu.PrefetchScalarGridSpec(
            num_scalar_prefetch=0,
            grid=grid,
            in_specs=[
                pl.BlockSpec((tb, tk), lambda i, k: (i, k)),        # x tile
                pl.BlockSpec((tk, Np), lambda i, k: (k, 0),
                             pipeline_mode=w_pipeline),             # W_flat tile
                pl.BlockSpec((1, Np), lambda i, k: (0, 0)),         # wide bias
            ],
            out_specs=pl.BlockSpec((tb, d_out_pad), lambda i, k: (i, 0)),
            scratch_shapes=[pltpu.VMEM((tb, Np), jnp.float32)],
        ),
        compiler_params=pltpu.CompilerParams(
            dimension_semantics=("parallel", "arbitrary"),
            vmem_limit_bytes=vmem_limit,
        ),
        cost_estimate=cost,
    )(x, w_flat, b_wide)

    if d_out_pad != d_out:
        out = out[:, :d_out]
    return out


def reference(x, w_stack, b_stack):
    # Pure-JAX reference of ModelAggregator.forward with linear sub-models,
    # using the same bf16-rounded MXU inputs as the kernel (f32 accumulation).
    xb = x.astype(jnp.bfloat16).astype(jnp.float32)
    wb = w_stack.astype(jnp.bfloat16).astype(jnp.float32)
    ys = (
        jnp.einsum("bd,mdo->bmo", xb, wb, precision=jax.lax.Precision.HIGHEST)
        + b_stack[None, :, :]
    )  # [B, M, D_out]  (== torch.stack([...], dim=-1) up to axis order)
    return jnp.maximum(ys, 0.0).mean(1)


if __name__ == "__main__":
    key = jax.random.PRNGKey(0)
    k1, k2, k3 = jax.random.split(key, 3)

    B, D_in, D_out, M = 8, 32, 128, 4  # batch, in-features, out-features, #models

    x = jax.random.normal(k1, (B, D_in), dtype=jnp.float32)
    # Deterministic synthetic sub-model parameters (no checkpoint loading).
    w_stack = jax.random.normal(k2, (M, D_in, D_out), dtype=jnp.float32) * 0.1
    b_stack = jax.random.normal(k3, (M, D_out), dtype=jnp.float32) * 0.1

    # Weight layout prepared ONCE (inference weights are static) — not per call.
    w_flat, b_wide = prepare_aggregator_params(w_stack, b_stack)
    w_flat = jax.block_until_ready(w_flat)
    b_wide = jax.block_until_ready(b_wide)

    out = model_aggregator(x, w_flat, b_wide, D_out)
    out = jax.block_until_ready(out)

    ref = reference(x, w_stack, b_stack)
    assert out.shape == (B, D_out)
    assert jnp.allclose(out, ref, atol=1e-4, rtol=1e-4), "mismatch vs reference"

    print("KERNEL_OK")
</pallas_src>

<mosaic_0001>
module attributes {stable_mosaic.version = 11 : i64} {
  func.func @_aggregator_kernel(%arg0: i32, %arg1: i32, %arg2: memref<8x32xf32, #tpu.memory_space<vmem>>, %arg3: memref<32x512xbf16, #tpu.memory_space<vmem>>, %arg4: memref<1x512xf32, #tpu.memory_space<vmem>>, %arg5: memref<8x128xf32, #tpu.memory_space<vmem>>, %arg6: memref<8x512xf32, #tpu.memory_space<vmem>>) attributes {dimension_semantics = [#tpu.dimension_semantics<parallel>, #tpu.dimension_semantics<arbitrary>], iteration_bounds = array<i64: 1, 1>, scalar_prefetch = 0 : i64, scratch_operands = 1 : i64, tpu.core_type = #tpu.core_type<tc>, window_params = [{transform_indices = @transform_0, window_bounds = array<i64: 8, 32>}, {pipeline_mode = #tpu.pipeline_mode<synchronous>, transform_indices = @transform_1, window_bounds = array<i64: 32, 512>}, {pipeline_mode = #tpu.pipeline_mode<synchronous>, transform_indices = @transform_2, window_bounds = array<i64: 1, 512>}, {transform_indices = @transform_3, window_bounds = array<i64: 8, 128>}]} {
    %c0_i32 = arith.constant 0 : i32
    %0 = arith.cmpi eq, %arg1, %c0_i32 : i32
    %1 = arith.extui %0 : i1 to i32
    %c0_i32_0 = arith.constant 0 : i32
    %2 = arith.cmpi ne, %1, %c0_i32_0 : i32
    scf.if %2 {
      %cst_10 = arith.constant 0.000000e+00 : f32
      %13 = vector.broadcast %cst_10 : f32 to vector<8x512xf32>
      %c0_11 = arith.constant 0 : index
      %c0_12 = arith.constant 0 : index
      %14 = vector.load %arg6[%c0_11, %c0_12] : memref<8x512xf32, #tpu.memory_space<vmem>>, vector<8x512xf32>
      tpu.vector_store %arg6[%c0_11, %c0_12], %13 {strides = array<i32>} : memref<8x512xf32, #tpu.memory_space<vmem>>, vector<8x512xf32>,
    } else {
    }
    %c0 = arith.constant 0 : index
    %c0_1 = arith.constant 0 : index
    %3 = vector.load %arg6[%c0, %c0_1] : memref<8x512xf32, #tpu.memory_space<vmem>>, vector<8x512xf32>
    %c0_2 = arith.constant 0 : index
    %c0_3 = arith.constant 0 : index
    %4 = vector.load %arg2[%c0_2, %c0_3] : memref<8x32xf32, #tpu.memory_space<vmem>>, vector<8x32xf32>
    %5 = arith.truncf %4 : vector<8x32xf32> to vector<8x32xbf16>
    %c0_4 = arith.constant 0 : index
    %c0_5 = arith.constant 0 : index
    %6 = vector.load %arg3[%c0_4, %c0_5] : memref<32x512xbf16, #tpu.memory_space<vmem>>, vector<32x512xbf16>
    %cst = arith.constant dense<0.000000e+00> : vector<8x512xf32>
    %7 = tpu.matmul %5, %6, %cst {dimension_numbers = #tpu.dot_dimension_numbers<[1], [0], [0], [1], [0, 0, 1, 1], [], []>} : vector<8x32xbf16>, vector<32x512xbf16>, vector<8x512xf32> -> vector<8x512xf32>
    %8 = arith.addf %3, %7 : vector<8x512xf32>
    %c0_6 = arith.constant 0 : index
    %c0_7 = arith.constant 0 : index
    %9 = vector.load %arg6[%c0_6, %c0_7] : memref<8x512xf32, #tpu.memory_space<vmem>>, vector<8x512xf32>
    tpu.vector_store %arg6[%c0_6, %c0_7], %8 {strides = array<i32>} : memref<8x512xf32, #tpu.memory_space<vmem>>, vector<8x512xf32>,
    %c0_i32_8 = arith.constant 0 : i32
    %10 = arith.cmpi eq, %arg1, %c0_i32_8 : i32
    %11 = arith.extui %10 : i1 to i32
    %c0_i32_9 = arith.constant 0 : i32
    %12 = arith.cmpi ne, %11, %c0_i32_9 : i32
    scf.if %12 {
      %c0_10 = arith.constant 0 : index
      %c0_11 = arith.constant 0 : index
      %13 = vector.load %arg6[%c0_10, %c0_11] : memref<8x512xf32, #tpu.memory_space<vmem>>, vector<8x512xf32>
      %c0_12 = arith.constant 0 : index
      %c0_13 = arith.constant 0 : index
      %14 = vector.load %arg4[%c0_12, %c0_13] : memref<1x512xf32, #tpu.memory_space<vmem>>, vector<1x512xf32>
      %15 = vector.broadcast %14 : vector<1x512xf32> to vector<8x512xf32>
      %16 = arith.addf %13, %15 : vector<8x512xf32>
      %cst_14 = arith.constant 0.000000e+00 : f32
      %17 = vector.broadcast %cst_14 : f32 to vector<8x512xf32>
      %18 = arith.maximumf %16, %17 : vector<8x512xf32>
      %19 = vector.extract_strided_slice %18 {offsets = [0, 0], sizes = [8, 128], strides = [1, 1]} : vector<8x512xf32> to vector<8x128xf32>
      %20 = vector.extract_strided_slice %18 {offsets = [0, 128], sizes = [8, 128], strides = [1, 1]} : vector<8x512xf32> to vector<8x128xf32>
      %21 = arith.addf %19, %20 : vector<8x128xf32>
      %22 = vector.extract_strided_slice %18 {offsets = [0, 256], sizes = [8, 128], strides = [1, 1]} : vector<8x512xf32> to vector<8x128xf32>
      %23 = arith.addf %21, %22 : vector<8x128xf32>
      %24 = vector.extract_strided_slice %18 {offsets = [0, 384], sizes = [8, 128], strides = [1, 1]} : vector<8x512xf32> to vector<8x128xf32>
      %25 = arith.addf %23, %24 : vector<8x128xf32>
      %cst_15 = arith.constant 2.500000e-01 : f32
      %26 = vector.broadcast %cst_15 : f32 to vector<8x128xf32>
      %27 = arith.mulf %25, %26 : vector<8x128xf32>
      %c0_16 = arith.constant 0 : index
      %c0_17 = arith.constant 0 : index
      %28 = vector.load %arg5[%c0_16, %c0_17] : memref<8x128xf32, #tpu.memory_space<vmem>>, vector<8x128xf32>
      tpu.vector_store %arg5[%c0_16, %c0_17], %27 {strides = array<i32>} : memref<8x128xf32, #tpu.memory_space<vmem>>, vector<8x128xf32>,
    } else {
    }
    return
  }
  func.func @transform_0(%arg0: i32, %arg1: i32) -> (i32, i32) {
    %c0_i32 = arith.constant 0 : i32
    return %arg0, %arg1 : i32, i32
  }
  func.func @transform_1(%arg0: i32, %arg1: i32) -> (i32, i32) {
    %c0_i32 = arith.constant 0 : i32
    %c0_i32_0 = arith.constant 0 : i32
    return %arg1, %c0_i32 : i32, i32
  }
  func.func @transform_2(%arg0: i32, %arg1: i32) -> (i32, i32) {
    %c0_i32 = arith.constant 0 : i32
    %c0_i32_0 = arith.constant 0 : i32
    %c0_i32_1 = arith.constant 0 : i32
    return %c0_i32, %c0_i32_0 : i32, i32
  }
  func.func @transform_3(%arg0: i32, %arg1: i32) -> (i32, i32) {
    %c0_i32 = arith.constant 0 : i32
    %c0_i32_0 = arith.constant 0 : i32
    return %arg0, %c0_i32 : i32, i32
  }
}

</mosaic_0001>

<bundles_post_ra>
// kernel: tpu_custom_call.1
= control target key start
LH: loop header
LB: loop body
LE: loop exit
PB: predicated region body
PF: predicated region fallthrough
CT: control target
= control target key end

     0   :  { %8 = vsyncpa [#allocation4], 0  ;;  %s421_s0 = inlined_call_operand.hbm [shape: f32[8,32], index: 0, kind: input, shape index: {}]   ;;  %s422_s1 = inlined_call_operand.hbm [shape: bf16[32,512], index: 1, kind: input, shape index: {}]   ;;  %s423_s2 = inlined_call_operand.hbm [shape: f32[1,512], index: 2, kind: input, shape index: {}]   ;;  %s424_s3 = inlined_call_operand.hbm [shape: f32[8,128], index: 3, kind: output, shape index: {}]  }
   0x1   :  { %9 = vsyncpa [#allocation7], 0 }
   0x2   :  { %10 = vsyncpa [#allocation5], 0  ;;  %s382_s12 = smov [#allocation6]  }
   0x3   :  { %s26_s13 = sshll.u32 %s382_s12, 4  ;;  %s27_s13 = int_to_ptr.vmem [resolvable:$true] %s26_s13 }
   0x4   :  { %s304_s14 = scalar_lea.vmem %s27_s13, 1024  ;;  %p309_p1 = scmp.lt.s32.totalorder %s27_s13, %s27_s13 }
   0x5   :  { %p305_p0 = scmp.ne.s32.totalorder %s27_s13, %s304_s14  ;;  %p310_p2 = scmp.lt.s32.totalorder %s304_s14, %s304_s14 }
   0x7   :  { %p311_p3 = por %p310_p2, %p309_p1 }
   0x9   :  { %p312_p4 = pnand %p311_p3, %p305_p0 }
   0xb   :  { %315 = shalt.err (!%p312_p4)
}
   0xc   :  { %s383_s15 = smov 256   ;;  %s384_s16 = smov 16  }
   0xd   :  { %32 = dma.hbm_to_vmem [thread:$0]  %s422_s1, 1024, %s27_s13, [#allocation7], %s383_s15, %s383_s15, %s384_s16  }
   0xe   :  { %s385_s19 = smov [#allocation3]   ;;  %s386_s21 = smov [#allocation8]  }
   0xf   :  { %s17_s20 = sshll.u32 %s385_s19, 4  ;;  %s39_s22 = sshll.u32 %s386_s21, 4  ;;  %s18_s20 = int_to_ptr.vmem [resolvable:$true] %s17_s20  ;;  %s40_s22 = int_to_ptr.vmem [resolvable:$true] %s39_s22 }
  0x10   :  { %s324_s23 = scalar_lea.vmem %s18_s20, 128  ;;  %p329_p6 = scmp.lt.s32.totalorder %s18_s20, %s18_s20 }
  0x11   :  { %p325_p5 = scmp.ne.s32.totalorder %s18_s20, %s324_s23  ;;  %p330_p7 = scmp.lt.s32.totalorder %s324_s23, %s324_s23 }
  0x13   :  { %p331_p8 = por %p330_p7, %p329_p6 }
  0x15   :  { %p332_p9 = pnand %p331_p8, %p325_p5 }
  0x17   :  { %335 = shalt.err (!%p332_p9)
}
  0x18   :  { %20 = dma.hbm_to_vmem [thread:$0]  %s421_s0, 128, %s18_s20, [#allocation4]  }
  0x19   :  { %s344_s26 = scalar_lea.vmem %s40_s22, 64  ;;  %p349_p11 = scmp.lt.s32.totalorder %s40_s22, %s40_s22 }
  0x1a   :  { %p345_p10 = scmp.ne.s32.totalorder %s40_s22, %s344_s26  ;;  %p350_p12 = scmp.lt.s32.totalorder %s344_s26, %s344_s26 }
  0x1c   :  { %p351_p13 = por %p350_p12, %p349_p11 }
  0x1e   :  { %p352_p0 = pnand %p351_p13, %p345_p10 }
  0x20   :  { %355 = shalt.err (!%p352_p0)
}
  0x21   :  { %42 = dma.hbm_to_vmem [thread:$0]  %s423_s2, 64, %s40_s22, [#allocation7]  }
  0x22   :  { %376 = dma.done.wait [#allocation4], 128  }
  0x23   :  { %377 = vsyncadd [#allocation4], 4294967168 }
  0x24   :  { %378 = dma.done.wait [#allocation7], 1088  }
  0x25   :  { %379 = vsyncadd [#allocation7], 4294966208  ;;  %v387_v0 = vmov 0   ;;  %v284_v1 = vld [vmem:[#allocation6 + $0x24] ss:$16 sps:$4 sm:$0xff]   ;;  %v65_v9 = vld [vmem:[#allocation3] sm:$0xff]  ;;  %v218_v11 = vlaneseq }
  0x26   :  { %151 = vmatprep.mubr.bf16.mxu0 %v387_v0  ;;  %192 = vmatprep.mubr.bf16.mxu1 %v387_v0  ;;  %v286_v2 = vld [vmem:[#allocation6 + $0x2c] ss:$16 sps:$4 sm:$0xff]   ;;  %v288_v3 = vld [vmem:[#allocation6 + $0x20] ss:$16 sps:$4 sm:$0xff]   ;;  %v289_v4 = vld [vmem:[#allocation6 + $0x28] ss:$16 sps:$4 sm:$0xff]   ;;  %v66_v10 = vpack.c.bf16 %v65_v9, %v65_v9 }
  0x27   :  { %131 = vmatprep.subr.bf16.mxu0 %v284_v1  ;;  %172 = vmatprep.subr.bf16.mxu1 %v286_v2  ;;  %v290_v5 = vld [vmem:[#allocation6 + $0x4] ss:$16 sps:$4 sm:$0xff]   ;;  %v292_v6 = vld [vmem:[#allocation6 + $0xc] ss:$16 sps:$4 sm:$0xff]   ;;  %v294_v7 = vld [vmem:[#allocation6] ss:$16 sps:$4 sm:$0xff]  }
  0x28   :  { %132 = vmatpush1.bf16.msra.mxu0 %v288_v3  ;;  %173 = vmatpush1.bf16.msra.mxu1 %v289_v4  ;;  %v295_v8 = vld [vmem:[#allocation6 + $0x8] ss:$16 sps:$4 sm:$0xff]   ;;  %vm115_vm0 = vcmask 261120   ;;  %v219_v12 = vshrl.u32 %v218_v11, 7  ;;  %v216_v15 = vld [vmem:[#allocation8] sm:$0xf] }
  0x29   :  { %133 = vmatprep.subr.bf16.mxu0 %v290_v5  ;;  %174 = vmatprep.subr.bf16.mxu1 %v292_v6  ;;  %s388_s0 = smov [#allocation9]  }
  0x2a   :  { %v220_v13 = vsub.s32 0, %v219_v12  ;;  %v228_v14 = vsub.s32 2, %v219_v12  ;;  %v224_v16 = vsub.s32 1, %v219_v12  ;;  %v232_v19 = vsub.s32 3, %v219_v12  ;;  %s257_s2 = sshll.u32 %s388_s0, 4  ;;  %s258_s2 = int_to_ptr.vmem [resolvable:$true] %s257_s2 }
  0x2b   :  { %s356_s28 = scalar_lea.vmem %s258_s2, 128  ;;  %p361_p2 = scmp.lt.s32.totalorder %s258_s2, %s258_s2 }
  0x2c   :  { %134 = vmatpush1.bf16.msra.mxu0 %v294_v7  ;;  %175 = vmatpush1.bf16.msra.mxu1 %v295_v8  ;;  %v221_v17 = vrot.slane %v216_v15, %v220_v13  ;;  %v229_v18 = vrot.slane %v216_v15, %v228_v14  ;;  %v225_v20 = vrot.slane %v216_v15, %v224_v16  ;;  %p357_p1 = scmp.ne.s32.totalorder %s258_s2, %s356_s28  ;;  %p362_p3 = scmp.lt.s32.totalorder %s356_s28, %s356_s28 }
  0x2d   :  { %v233_v25 = vrot.slane %v216_v15, %v232_v19 }
  0x2e   :  { %p363_p4 = por %p362_p3, %p361_p2 }
  0x2f   :  { %275 = vmatmul.mubr.msk.bf16.vlgmr.msra.gmra.mxu0 %vm115_vm0, %v66_v10  ;;  %276 = vmatmul.mubr.msk.bf16.vlgmr.msra.gmra.mxu1 %vm115_vm0, %v66_v10 }
  0x30   :  { %p364_p5 = pnand %p363_p4, %p357_p1 }
  0xef   :  { %v153_v21 = vpop.f32.mrf.mxu0  ;;  %v194_v22 = vpop.f32.mrf.mxu1 }
  0xf0   :  { %v238_v23 = vadd.f32 %v221_v17, %v153_v21  ;;  %v240_v24 = vadd.f32 %v229_v18, %v194_v22 }
  0xf1   :  { %v155_v26 = vpop.f32.mrf.mxu0  ;;  %v196_v27 = vpop.f32.mrf.mxu1 }
  0xf2   :  { %v239_v28 = vadd.f32 %v225_v20, %v155_v26  ;;  %v242_v31 = vmax.f32 %v238_v23, 0.0  ;;  %v244_v32 = vmax.f32 %v240_v24, 0.0  ;;  %v241_v34 = vadd.f32 %v233_v25, %v196_v27 }
  0xf3   :  { %v157_v29 = vpop.f32.mrf.mxu0  ;;  %v198_v30 = vpop.f32.mrf.mxu1 }
  0xf4   :  { %v243_v33 = vmax.f32 %v239_v28, 0.0  ;;  %v245_v38 = vmax.f32 %v241_v34, 0.0 }
  0xf5   :  { %v158_v35 = vpop.f32.mrf.mxu0  ;;  %v199_v36 = vpop.f32.mrf.mxu1 }
  0xf6   :  { %v246_v37 = vadd.f32 %v243_v33, %v242_v31 }
  0xf8   :  { %v247_v39 = vadd.f32 %v246_v37, %v244_v32 }
  0xfa   :  { %v248_v40 = vadd.f32 %v247_v39, %v245_v38 }
  0xfc   :  { %v249_v41 = vmul.f32 0.25, %v248_v40 }
  0xfe   :  { %250 = vst [vmem:[#allocation9] sm:$0xff] %v249_v41 }
  0xff   :  { %367 = shalt.err (!%p364_p5)
}
 0x100   :  { %260 = dma.vmem_to_hbm [thread:$0]  %s258_s2, 128, %s424_s3, [#allocation5]  }
 0x101   :  { %380 = dma.done.wait [#allocation5], 128  }
 0x102   :  { %381 = vsyncadd [#allocation5], 4294967168 }
 0x103   :  { %264 = vsyncpa [#allocation4], 1 }
 0x104   :  { %265 = vsyncpa [#allocation7], 1 }
 0x105   :  { %266 = vsyncpa [#allocation5], 1 }

</bundles_post_ra>
